<compile_context>
chip_gen: v7x
topology: tpu7x:2x2x1
jax: 0.10.0
libtpu: 0.0.40
codegen_flags: <defaults>
</compile_context>

<pallas_src>
import math
from functools import lru_cache

import jax
import jax.numpy as jnp
from jax.experimental import pallas as pl
from jax.experimental.pallas import tpu as pltpu

_LANE = 128
_SUBLANE = 8


def _round_up(x, m):
    return ((x + m - 1) // m) * m


def _largest_divisor_multiple_of(k, base, cap):
    """Largest multiple of `base` that divides k and is <= cap; None if none."""
    best = None
    d = base
    while d <= min(k, cap):
        if k % d == 0:
            best = d
        d += base
    return best


# ----------------------------- hardware config ---------------------------------

@lru_cache(maxsize=None)
def _tpu_config():
    """Generation-aware budgets / tiling granularity (v5e / v6e / v7x)."""
    kind = ""
    try:
        kind = jax.devices()[0].device_kind.lower()
    except Exception:
        pass
    vmem_cap = None
    try:
        vmem_cap = int(pltpu.get_tpu_info().vmem_capacity_bytes)
    except Exception:
        vmem_cap = None
    is_v5e = "v5" in kind
    is_v7x = ("v7" in kind) or ("7x" in kind)
    if vmem_cap is None:
        vmem_cap = (128 << 20) if (is_v5e or "v6" in kind) else (64 << 20)
    if is_v7x or vmem_cap < (100 << 20):
        # v7x: 64 MiB per TensorCore -> explicit headroom for double buffers.
        vmem_limit, tile_budget = 48 << 20, 28 << 20
    else:
        # v5e / v6e: 128 MiB physical VMEM -> keep big K resident, 1024-tall tiles.
        vmem_limit, tile_budget = 96 << 20, 48 << 20
    return {
        "vmem_limit": vmem_limit,
        "tile_budget": tile_budget,
        # v5e MXU is 4x128^2 -> 128 granularity; v6e/v7x are 2x256^2 -> prefer 256.
        "mxu_tile": 128 if is_v5e else 256,
        "min_bm": 128 if is_v5e else 256,
        # Only v7x has 2 TensorCores per chip; splitting blocks on 1-TC chips is
        # pure per-grid-step overhead.
        "megacore": is_v7x,
    }


@lru_cache(maxsize=None)
def _single_buffer_supported():
    """Probe (AOT compile only, no execution) whether pipeline_mode=pl.Buffered(1)
    is accepted by this JAX/Mosaic version.  Fallback: default double buffering."""
    try:
        if not hasattr(pl, "Buffered"):
            return False

        def k(x_ref, o_ref):
            o_ref[...] = x_ref[...]

        def run(x):
            return pl.pallas_call(
                k,
                out_shape=jax.ShapeDtypeStruct((16, 128), jnp.float32),
                grid=(2,),
                in_specs=[pl.BlockSpec((8, 128), lambda i: (0, 0),
                                       pipeline_mode=pl.Buffered(1))],
                out_specs=pl.BlockSpec((8, 128), lambda i: (i, 0)),
            )(x)

        jax.jit(run).lower(jax.ShapeDtypeStruct((8, 128), jnp.float32)).compile()
        return True
    except Exception:
        return False


# --------------------- fast path: reduction fully resident ---------------------

def _matmul_fullk_kernel(x_ref, w_ref, o_ref):
    o_ref[...] = jnp.dot(x_ref[...], w_ref[...],
                         preferred_element_type=jnp.float32).astype(o_ref.dtype)


def _matmul_fullk(x, w, out_dtype, bm, bn, vmem_limit_bytes, single_buffer_w):
    M, K = x.shape
    _, N = w.shape
    gi, gj = pl.cdiv(M, bm), pl.cdiv(N, bn)
    # N-tile index on the SLOW grid axis: each W_eff column tile is DMA'd exactly
    # once while x streams along the fast axis.  With bn == N (the usual PHM
    # case) gj == 1 and W_eff is fetched exactly once total.
    w_kwargs = {}
    if single_buffer_w:
        # W_eff's block index never changes -> no point double-buffering it;
        # halves its VMEM footprint and frees budget for taller x tiles.
        w_kwargs["pipeline_mode"] = pl.Buffered(1)
    return pl.pallas_call(
        _matmul_fullk_kernel,
        out_shape=jax.ShapeDtypeStruct((M, N), out_dtype),
        grid_spec=pltpu.PrefetchScalarGridSpec(
            num_scalar_prefetch=0,
            grid=(gj, gi),
            in_specs=[pl.BlockSpec((bm, K), lambda j, i: (i, 0)),
                      pl.BlockSpec((K, bn), lambda j, i: (0, j), **w_kwargs)],
            out_specs=pl.BlockSpec((bm, bn), lambda j, i: (i, j))),
        compiler_params=pltpu.CompilerParams(
            dimension_semantics=("parallel", "parallel"),
            vmem_limit_bytes=vmem_limit_bytes),
    )(x, w)


# --------------------- fallback: K-tiled reduction with accumulator ------------

def _matmul_tiledk_kernel(x_ref, w_ref, o_ref, acc_ref):
    @pl.when(pl.program_id(2) == 0)
    def _():
        acc_ref[...] = jnp.zeros_like(acc_ref)

    acc_ref[...] += jnp.dot(x_ref[...], w_ref[...],
                            preferred_element_type=jnp.float32)

    @pl.when(pl.program_id(2) == pl.num_programs(2) - 1)
    def _():
        o_ref[...] = acc_ref[...].astype(o_ref.dtype)


def _matmul_tiledk(x, w, out_dtype, bm, bn, bk, vmem_limit_bytes):
    M, K = x.shape
    _, N = w.shape
    assert K % bk == 0, (K, bk)   # never accumulate padded garbage along K
    grid = (pl.cdiv(M, bm), pl.cdiv(N, bn), K // bk)
    # TODO(synk): cold path for PHM shapes.  If it ever becomes hot, make the
    # N-tile index the slow axis and/or use pl.Buffered(3) on the streaming
    # operand to cut redundant HBM traffic / hide exposed DMA latency.
    return pl.pallas_call(
        _matmul_tiledk_kernel,
        out_shape=jax.ShapeDtypeStruct((M, N), out_dtype),
        grid_spec=pltpu.PrefetchScalarGridSpec(
            num_scalar_prefetch=0,
            grid=grid,
            in_specs=[pl.BlockSpec((bm, bk), lambda i, j, k: (i, k)),
                      pl.BlockSpec((bk, bn), lambda i, j, k: (k, j))],
            out_specs=pl.BlockSpec((bm, bn), lambda i, j, k: (i, j)),
            scratch_shapes=[pltpu.VMEM((bm, bn), jnp.float32)]),
        compiler_params=pltpu.CompilerParams(
            dimension_semantics=("parallel", "parallel", "arbitrary"),
            vmem_limit_bytes=vmem_limit_bytes),
    )(x, w)


# ------------------------------ tile selection ----------------------------------

def _pick_fullk_tiles(M, K, N, in_item, out_item, cfg, tm, tn, single_buf_ok):
    """Pick (bm, bn) for the K-resident path.  Returns (bm, bn, fits)."""
    sub = 16 if in_item <= 2 else _SUBLANE     # bf16 packs 16 sublanes per vreg
    budget = cfg["tile_budget"]
    min_bm = min(cfg["min_bm"], _round_up(M, sub))

    def tile_bytes(bm_, bn_):
        w_copies = 1 if (single_buf_ok and bn_ == N) else 2
        return (2 * bm_ * K * in_item            # x tile, double-buffered
                + w_copies * K * bn_ * in_item   # W_eff tile
                + 2 * bm_ * bn_ * out_item)      # output tile, double-buffered

    bm0 = M if M <= tm else (tm // sub) * sub

    # bn candidates: full N first (W_eff DMA'd exactly once), then lane-aligned
    # halvings down to 128.
    cands = [N]
    b = min((tn // _LANE) * _LANE, ((N - 1) // _LANE) * _LANE)
    while b >= _LANE:
        cands.append(b)
        b //= 2

    for bn_ in cands:
        bm_ = bm0
        while bm_ > min_bm and tile_bytes(bm_, bn_) > budget:
            bm_ = max(min_bm, ((bm_ // 2) // sub) * sub)
        if tile_bytes(bm_, bn_) <= budget:
            return bm_, bn_, True

    # Nothing fits with healthy M tiles: degenerate fallback (only used when the
    # K-tiled path is unavailable).
    bn_ = cands[-1]
    bm_ = min_bm
    while bm_ > sub and tile_bytes(bm_, bn_) > budget:
        bm_ = max(sub, ((bm_ // 2) // sub) * sub)
    return bm_, bn_, tile_bytes(bm_, bn_) <= budget


def phm_matmul(x, w, *, out_dtype=None, tm=1024, tn=512, tk=512,
               force_tiled_k=False, force_pallas=False,
               small_bypass_elems=2 * (128 ** 3)):
    """out = x @ w with f32 accumulation. x:(M,K), w:(K,N)."""
    M, K = x.shape
    K2, N = w.shape
    assert K == K2, (K, K2)
    if out_dtype is None:
        out_dtype = x.dtype

    # Small-problem bypass: for tiny adapters the custom-call launch / grid
    # overhead dominates; let XLA fuse the matmul with the W_eff folding instead.
    if (not force_pallas) and (not force_tiled_k) and M * N * K <= small_bypass_elems:
        return jnp.dot(x, w, preferred_element_type=jnp.float32).astype(out_dtype)

    cfg = _tpu_config()
    in_item = jnp.dtype(x.dtype).itemsize
    out_item = jnp.dtype(out_dtype).itemsize
    single_buf_ok = _single_buffer_supported()

    bm, bn, fits = _pick_fullk_tiles(M, K, N, in_item, out_item, cfg, tm, tn,
                                     single_buf_ok)

    # K tile for the tiled fallback: prefer the MXU contraction depth
    # (256 on v6e/v7x, 128 on v5e) and only accept divisors of K.
    bk = _largest_divisor_multiple_of(K, cfg["mxu_tile"], tk)
    if bk is None:
        bk = _largest_divisor_multiple_of(K, _LANE, tk)
    can_tile_k = (bk is not None) and (bk < K)

    if force_tiled_k and can_tile_k:
        use_fullk = False
    elif fits:
        use_fullk = True
    else:
        use_fullk = not can_tile_k   # degenerate full-K only as a last resort

    if use_fullk:
        sub = 16 if in_item <= 2 else _SUBLANE
        gi, gj = pl.cdiv(M, bm), pl.cdiv(N, bn)
        # v7x megacore: make sure there are >= 2 parallel blocks so both
        # TensorCores get work; never split on single-core chips.
        if cfg["megacore"] and gi * gj < 2 and M > sub:
            bm = max(sub, _round_up(-(-M // 2), sub))
        single_buffer_w = single_buf_ok and (bn == N)
        return _matmul_fullk(x, w, out_dtype, bm, bn, cfg["vmem_limit"],
                             single_buffer_w)

    sub = 16 if in_item <= 2 else _SUBLANE
    t_bm = M if M <= 512 else (512 // sub) * sub
    t_bn = N if N <= 512 else 512
    return _matmul_tiledk(x, w, out_dtype, t_bm, t_bn, bk, cfg["vmem_limit"])


# ------------------------------ PHM forward -------------------------------------

def phm_linear_forward(x, w_left, w_right_left, w_right_right, *, n,
                       use_bf16=True, out_dtype=None, force_pallas=False):
    """Pallas-backed PHMLinear forward. x: (B, S, indim) -> (B, S, outdim)."""
    B, S, indim = x.shape
    assert indim % n == 0
    rin = indim // n
    rout = w_right_right.shape[-1]
    outdim = n * rout

    hp = jax.lax.Precision.HIGHEST
    # Fold the three small factors into one effective (indim, outdim) matrix.
    # M_e = W1[e] @ W2[e]  (n, rin, rout) -- tiny rank-bottleneck matmul.
    M_e = jnp.einsum('ejr,ero->ejo', w_right_left, w_right_right, precision=hp)
    # W_eff[i*rin+j, o*n+k] = sum_e M_e[e,j,o] * WL[e,i,k]
    w_eff = jnp.einsum('ejo,eik->ijok', M_e, w_left, precision=hp)
    w_eff = w_eff.reshape(indim, rout * n)

    # Lane-dense stores: pad the output (column) axis up to a multiple of 128 so
    # the kernel issues unmasked full-lane vst, then slice back afterwards.
    n_pad = _round_up(outdim, _LANE)
    if n_pad != outdim:
        w_eff = jnp.pad(w_eff, ((0, 0), (0, n_pad - outdim)))

    x_flat = x.reshape(B * S, indim)
    if out_dtype is None:
        out_dtype = x.dtype            # pass jnp.bfloat16 in bf16 models (v5e tip)
    if use_bf16:
        # bf16 operands for the MXU; accumulation stays f32 inside the kernel.
        x_flat = x_flat.astype(jnp.bfloat16)
        w_eff = w_eff.astype(jnp.bfloat16)

    out = phm_matmul(x_flat, w_eff, out_dtype=out_dtype, force_pallas=force_pallas)
    if n_pad != outdim:
        out = out[:, :outdim]
    return out.reshape(B, S, outdim)


# Jit the whole forward so the W_eff folding + bf16 cast fuse / constant-fold.
phm_linear_forward_jit = jax.jit(
    phm_linear_forward,
    static_argnames=("n", "use_bf16", "out_dtype", "force_pallas"))


# ------------------------- pure-JAX reference (torch-mirror) --------------------

def phm_linear_reference(x, w_left, w_right_left, w_right_right, n):
    B, S, indim = x.shape
    rin = indim // n
    hp = jax.lax.Precision.HIGHEST
    xr = x.reshape(B, S, 1, n, rin)                               # view
    a = jnp.matmul(xr, w_right_left, precision=hp)                # (B,S,n,n,rank)
    a = jnp.matmul(a, w_right_right, precision=hp)                # (B,S,n,n,rout)
    a = jnp.swapaxes(a, -2, -1)                                   # transpose(-2,-1)
    a = jnp.matmul(a, w_left, precision=hp)                       # (B,S,n,rout,n)
    a = a.reshape(B, S, n, -1)                                    # view
    return jnp.sum(a, axis=-2)                                    # sum over ensemble


# ------------------------------ param init --------------------------------------

def xavier_normal_3d(key, shape, gain):
    """xavier_normal_ matching torch fan computation for 3-D weights."""
    ensemble, in_dim, out_dim = shape
    receptive = out_dim                      # prod of dims[2:]
    fan_in = in_dim * receptive
    fan_out = ensemble * receptive
    std = gain * math.sqrt(2.0 / (fan_in + fan_out))
    return std * jax.random.normal(key, shape, dtype=jnp.float32)


# --------------------------------- main ------------------------------------------

if __name__ == "__main__":
    key = jax.random.PRNGKey(0)
    kx, k1, k2, k3, kx2, k4, k5, k6, k7, k8 = jax.random.split(key, 10)

    # Warm the host-side feature probes outside of any jit trace.
    _tpu_config()
    _single_buffer_supported()

    gain = math.sqrt(2.0)

    # ---- config 1: lane-aligned outdim (the common case) -----------------------
    B, S = 2, 64
    indim, outdim, n, rank = 128, 128, 4, 1
    rin, rout = indim // n, outdim // n
    x = jax.random.normal(kx, (B, S, indim), dtype=jnp.float32)
    w_left = xavier_normal_3d(k1, (n, n, n), gain)                 # left_inner.weight
    w_right_left = xavier_normal_3d(k2, (n, rin, rank), gain)      # right_inner_left.weight
    w_right_right = xavier_normal_3d(k3, (n, rank, rout), gain)    # right_inner_right.weight

    # force_pallas=True so the demo exercises the Pallas kernel (the default
    # small-problem bypass would hand this tiny shape to fused XLA).
    out = phm_linear_forward_jit(x, w_left, w_right_left, w_right_right,
                                 n=n, force_pallas=True)
    out = jax.block_until_ready(out)
    ref = phm_linear_reference(x, w_left, w_right_left, w_right_right, n)
    ref = jax.block_until_ready(ref)
    assert out.shape == (B, S, outdim), out.shape
    assert out.dtype == jnp.float32
    err = float(jnp.max(jnp.abs(out - ref)))
    # bf16 operands / f32 accumulation vs. an all-f32 HIGHEST-precision reference.
    assert jnp.allclose(out, ref, rtol=2e-2, atol=2e-2), err

    # ---- config 2: outdim NOT a multiple of 128 (pad-to-lane + slice path) -----
    B2, S2 = 2, 16
    indim2, outdim2, n2, rank2 = 64, 96, 4, 2
    rin2, rout2 = indim2 // n2, outdim2 // n2
    x2 = jax.random.normal(kx2, (B2, S2, indim2), dtype=jnp.float32)
    w_left2 = xavier_normal_3d(k4, (n2, n2, n2), gain)
    w_right_left2 = xavier_normal_3d(k5, (n2, rin2, rank2), gain)
    w_right_right2 = xavier_normal_3d(k6, (n2, rank2, rout2), gain)
    out2 = phm_linear_forward_jit(x2, w_left2, w_right_left2, w_right_right2,
                                  n=n2, force_pallas=True)
    out2 = jax.block_until_ready(out2)
    ref2 = phm_linear_reference(x2, w_left2, w_right_left2, w_right_right2, n2)
    assert out2.shape == (B2, S2, outdim2), out2.shape
    err2 = float(jnp.max(jnp.abs(out2 - ref2)))
    assert jnp.allclose(out2, ref2, rtol=2e-2, atol=2e-2), err2

    # ---- K-tiled fallback path (used when indim is too large to keep resident) --
    xa = jax.random.normal(k7, (256, 256), dtype=jnp.float32).astype(jnp.bfloat16)
    wb = jax.random.normal(k8, (256, 384), dtype=jnp.float32).astype(jnp.bfloat16)
    out3 = phm_matmul(xa, wb, out_dtype=jnp.float32, tk=128, force_tiled_k=True)
    out3 = jax.block_until_ready(out3)
    ref3 = jnp.dot(xa, wb, preferred_element_type=jnp.float32)
    err3 = float(jnp.max(jnp.abs(out3 - ref3)))
    assert jnp.allclose(out3, ref3, rtol=1e-2, atol=1e-2), err3

    # ---- small-problem bypass (no pallas_call; fused XLA path) ------------------
    out4 = phm_linear_forward(x2, w_left2, w_right_left2, w_right_right2, n=n2)
    out4 = jax.block_until_ready(out4)
    assert jnp.allclose(out4, ref2, rtol=2e-2, atol=2e-2)

    print("KERNEL_OK")
</pallas_src>

<mosaic_0001>
module attributes {stable_mosaic.version = 11 : i64} {
  func.func @_matmul_fullk_kernel(%arg0: i32, %arg1: i32, %arg2: memref<128x128xbf16, #tpu.memory_space<vmem>>, %arg3: memref<128x128xbf16, #tpu.memory_space<vmem>>, %arg4: memref<128x128xf32, #tpu.memory_space<vmem>>) attributes {dimension_semantics = [#tpu.dimension_semantics<parallel>, #tpu.dimension_semantics<parallel>], iteration_bounds = array<i64: 1, 1>, scalar_prefetch = 0 : i64, scratch_operands = 0 : i64, tpu.core_type = #tpu.core_type<tc>, window_params = [{transform_indices = @transform_0, window_bounds = array<i64: 128, 128>}, {transform_indices = @transform_1, window_bounds = array<i64: 128, 128>}, {transform_indices = @transform_2, window_bounds = array<i64: 128, 128>}]} {
    %c0 = arith.constant 0 : index
    %c0_0 = arith.constant 0 : index
    %0 = vector.load %arg2[%c0, %c0_0] : memref<128x128xbf16, #tpu.memory_space<vmem>>, vector<128x128xbf16>
    %c0_1 = arith.constant 0 : index
    %c0_2 = arith.constant 0 : index
    %1 = vector.load %arg3[%c0_1, %c0_2] : memref<128x128xbf16, #tpu.memory_space<vmem>>, vector<128x128xbf16>
    %cst = arith.constant dense<0.000000e+00> : vector<128x128xf32>
    %2 = tpu.matmul %0, %1, %cst {dimension_numbers = #tpu.dot_dimension_numbers<[1], [0], [0], [1], [0, 0, 1, 1], [], []>} : vector<128x128xbf16>, vector<128x128xbf16>, vector<128x128xf32> -> vector<128x128xf32>
    %c0_3 = arith.constant 0 : index
    %c0_4 = arith.constant 0 : index
    %3 = vector.load %arg4[%c0_3, %c0_4] : memref<128x128xf32, #tpu.memory_space<vmem>>, vector<128x128xf32>
    tpu.vector_store %arg4[%c0_3, %c0_4], %2 {strides = array<i32>} : memref<128x128xf32, #tpu.memory_space<vmem>>, vector<128x128xf32>,
    return
  }
  func.func @transform_0(%arg0: i32, %arg1: i32) -> (i32, i32) {
    %c0_i32 = arith.constant 0 : i32
    %c0_i32_0 = arith.constant 0 : i32
    return %arg1, %c0_i32 : i32, i32
  }
  func.func @transform_1(%arg0: i32, %arg1: i32) -> (i32, i32) {
    %c0_i32 = arith.constant 0 : i32
    %c0_i32_0 = arith.constant 0 : i32
    return %c0_i32, %arg0 : i32, i32
  }
  func.func @transform_2(%arg0: i32, %arg1: i32) -> (i32, i32) {
    %c0_i32 = arith.constant 0 : i32
    return %arg1, %arg0 : i32, i32
  }
}

</mosaic_0001>

<bundles_post_ra>
// kernel: phm_linear_forward.1
= control target key start
LH: loop header
LB: loop body
LE: loop exit
PB: predicated region body
PF: predicated region fallthrough
CT: control target
= control target key end

     0   :  { %s471_s0 = inlined_call_operand.vmem [shape: bf16[128,128], index: 0, kind: input, shape index: {}]   ;;  %s472_s1 = inlined_call_operand.vmem [shape: bf16[128,128], index: 1, kind: input, shape index: {}]   ;;  %s473_s2 = inlined_call_operand.hbm [shape: f32[128,128], index: 2, kind: output, shape index: {}]  }
   0x1   :  { %v353_v0 = vld [vmem:[%s472_s1] sm:$0xff]   ;;  %v354_v1 = vld [vmem:[%s472_s1 + $0x8] sm:$0xff]   ;;  %v355_v2 = vld [vmem:[%s472_s1 + $0x10] sm:$0xff]  }
   0x2   :  { %302 = vmatprep.subr.bf16.mxu0 %v353_v0  ;;  %334 = vmatprep.subr.bf16.mxu1 %v353_v0  ;;  %v356_v3 = vld [vmem:[%s472_s1 + $0x18] sm:$0xff]   ;;  %v361_v4 = vld [vmem:[%s471_s0] sm:$0xff]   ;;  %v358_v7 = vld [vmem:[%s472_s1 + $0x28] sm:$0xff]  }
   0x3   :  { %303 = vmatpush3.bf16.msra.mxu0 %v353_v0  ;;  %342 = vmatpush3.bf16.msra.mxu1 %v353_v0  ;;  %v362_v5 = vld [vmem:[%s471_s0 + $0x20] sm:$0xff]  }
   0x4   :  { %304 = vmatprep.subr.bf16.mxu0 %v354_v1  ;;  %335 = vmatprep.subr.bf16.mxu1 %v354_v1  ;;  %v357_v6 = vld [vmem:[%s472_s1 + $0x20] sm:$0xff]  }
   0x5   :  { %318 = vmatprep.mubr.bf16.mxu0 %v361_v4  ;;  %326 = vmatprep.mubr.bf16.mxu1 %v362_v5 }
   0x7   :  { %305 = vmatpush3.bf16.msra.mxu0 %v354_v1  ;;  %343 = vmatpush3.bf16.msra.mxu1 %v354_v1 }
   0x8   :  { %306 = vmatprep.subr.bf16.mxu0 %v355_v2  ;;  %336 = vmatprep.subr.bf16.mxu1 %v355_v2 }
   0xb   :  { %307 = vmatpush3.bf16.msra.mxu0 %v355_v2  ;;  %344 = vmatpush3.bf16.msra.mxu1 %v355_v2 }
   0xc   :  { %308 = vmatprep.subr.bf16.mxu0 %v356_v3  ;;  %337 = vmatprep.subr.bf16.mxu1 %v356_v3 }
   0xf   :  { %309 = vmatpush3.bf16.msra.mxu0 %v356_v3  ;;  %345 = vmatpush3.bf16.msra.mxu1 %v356_v3 }
  0x10   :  { %310 = vmatprep.subr.bf16.mxu0 %v357_v6  ;;  %338 = vmatprep.subr.bf16.mxu1 %v357_v6 }
  0x11   :  { %7 = vsyncpa [#allocation3], 0  ;;  %v359_v8 = vld [vmem:[%s472_s1 + $0x30] sm:$0xff]   ;;  %v360_v9 = vld [vmem:[%s472_s1 + $0x38] sm:$0xff]   ;;  %s393_s12 = smov [#allocation2]  }
  0x12   :  { %v363_v10 = vld [vmem:[%s471_s0 + $0x8] sm:$0xff]   ;;  %v365_v12 = vld [vmem:[%s471_s0 + $0x10] sm:$0xff]   ;;  %v367_v14 = vld [vmem:[%s471_s0 + $0x18] sm:$0xff]  }
  0x13   :  { %311 = vmatpush3.bf16.msra.mxu0 %v357_v6  ;;  %346 = vmatpush3.bf16.msra.mxu1 %v357_v6  ;;  %v364_v11 = vld [vmem:[%s471_s0 + $0x28] sm:$0xff]   ;;  %v366_v13 = vld [vmem:[%s471_s0 + $0x30] sm:$0xff]   ;;  %v368_v15 = vld [vmem:[%s471_s0 + $0x38] sm:$0xff]   ;;  %s259_s0 = sshll.u32 %s393_s12, 4  ;;  %s260_s0 = int_to_ptr.vmem [resolvable:$true] %s259_s0 }
  0x14   :  { %312 = vmatprep.subr.bf16.mxu0 %v358_v7  ;;  %339 = vmatprep.subr.bf16.mxu1 %v358_v7  ;;  %s369_s13 = scalar_lea.vmem %s260_s0, 2048  ;;  %p374_p1 = scmp.lt.s32.totalorder %s260_s0, %s260_s0 }
  0x15   :  { %p370_p0 = scmp.ne.s32.totalorder %s260_s0, %s369_s13  ;;  %p375_p2 = scmp.lt.s32.totalorder %s369_s13, %s369_s13 }
  0x17   :  { %313 = vmatpush3.bf16.msra.mxu0 %v358_v7  ;;  %347 = vmatpush3.bf16.msra.mxu1 %v358_v7  ;;  %p376_p3 = por %p375_p2, %p374_p1 }
  0x18   :  { %314 = vmatprep.subr.bf16.mxu0 %v359_v8  ;;  %340 = vmatprep.subr.bf16.mxu1 %v359_v8 }
  0x19   :  { %p377_p4 = pnand %p376_p3, %p370_p0 }
  0x1b   :  { %315 = vmatpush3.bf16.msra.mxu0 %v359_v8  ;;  %348 = vmatpush3.bf16.msra.mxu1 %v359_v8 }
  0x1c   :  { %316 = vmatprep.subr.bf16.mxu0 %v360_v9  ;;  %341 = vmatprep.subr.bf16.mxu1 %v360_v9 }
  0x1f   :  { %317 = vmatpush3.bf16.msra.mxu0 %v360_v9  ;;  %349 = vmatpush3.bf16.msra.mxu1 %v360_v9 }
  0x22   :  { %319 = vmatmul.mubr.bf16.vlgmr.msra.gmra.mrb[0].mxu0 %v363_v10  ;;  %327 = vmatmul.mubr.bf16.vlgmr.msra.gmra.mrb[0].mxu1 %v364_v11 }
  0x23   :  { %322 = vmatprep.mubr.bf16.mxu0 %v365_v12  ;;  %330 = vmatprep.mubr.bf16.mxu1 %v366_v13 }
  0x2a   :  { %323 = vmatmul.mubr.bf16.gmra.mrb[4].mxu0 %v367_v14  ;;  %331 = vmatmul.mubr.bf16.gmra.mrb[4].mxu1 %v368_v15 }
  0xf5   :  { %v320_v16 = vpop.f32.mrb[0].mxu0  ;;  %v328_v17 = vpop.f32.mrb[0].mxu1 }
  0xf6   :  { %240 = vst [vmem:[#allocation2 + $0x10] sm:$0xff] %v320_v16  ;;  %248 = vst [vmem:[#allocation2 + $0x50] sm:$0xff] %v328_v17  ;;  %v175_v18 = vpop.f32.mrb[1].mxu0  ;;  %v207_v19 = vpop.f32.mrb[1].mxu1 }
  0xf7   :  { %238 = vst [vmem:[#allocation2] sm:$0xff] %v175_v18  ;;  %246 = vst [vmem:[#allocation2 + $0x40] sm:$0xff] %v207_v19  ;;  %v321_v20 = vpop.f32.mrb[2].mxu0  ;;  %v329_v21 = vpop.f32.mrb[2].mxu1 }
  0xf8   :  { %241 = vst [vmem:[#allocation2 + $0x18] sm:$0xff] %v321_v20  ;;  %249 = vst [vmem:[#allocation2 + $0x58] sm:$0xff] %v329_v21  ;;  %v178_v22 = vpop.f32.mrb[3].mxu0  ;;  %v210_v23 = vpop.f32.mrb[3].mxu1 }
  0xf9   :  { %239 = vst [vmem:[#allocation2 + $0x8] sm:$0xff] %v178_v22  ;;  %247 = vst [vmem:[#allocation2 + $0x48] sm:$0xff] %v210_v23 }
  0xfd   :  { %v324_v24 = vpop.f32.mrb[4].mxu0  ;;  %v332_v25 = vpop.f32.mrb[4].mxu1 }
  0xfe   :  { %244 = vst [vmem:[#allocation2 + $0x30] sm:$0xff] %v324_v24  ;;  %252 = vst [vmem:[#allocation2 + $0x70] sm:$0xff] %v332_v25  ;;  %v191_v26 = vpop.f32.mrb[5].mxu0  ;;  %v223_v27 = vpop.f32.mrb[5].mxu1 }
  0xff   :  { %242 = vst [vmem:[#allocation2 + $0x20] sm:$0xff] %v191_v26  ;;  %250 = vst [vmem:[#allocation2 + $0x60] sm:$0xff] %v223_v27  ;;  %v325_v28 = vpop.f32.mrb[6].mxu0  ;;  %v333_v29 = vpop.f32.mrb[6].mxu1 }
 0x100   :  { %245 = vst [vmem:[#allocation2 + $0x38] sm:$0xff] %v325_v28  ;;  %253 = vst [vmem:[#allocation2 + $0x78] sm:$0xff] %v333_v29  ;;  %v194_v30 = vpop.f32.mrb[7].mxu0  ;;  %v226_v31 = vpop.f32.mrb[7].mxu1 }
 0x101   :  { %243 = vst [vmem:[#allocation2 + $0x28] sm:$0xff] %v194_v30  ;;  %251 = vst [vmem:[#allocation2 + $0x68] sm:$0xff] %v226_v31 }
 0x102   :  { %380 = shalt.err (!%p377_p4)
}
 0x103   :  { %s381_s16 = scalar_lea.hbm %s473_s2, 2048 }
 0x104   :  { %p382_p5 = scmp.ne.s32.totalorder %s473_s2, %s381_s16  ;;  %p385_p6 = scmp.lt.u32.totalorder %s381_s16, %s473_s2 }
 0x106   :  { %p387_p7 = pnand %p385_p6, %p382_p5 }
 0x108   :  { %390 = shalt.err (!%p387_p7)
}
 0x109   :  { %s394_s21 = smov 128   ;;  %s395_s22 = smov 8  }
 0x10a   :  { %265 = dma.vmem_to_hbm [thread:$0]  %s260_s0, 2048, %s473_s2, [#allocation3], %s394_s21, %s394_s21, %s395_s22  }
 0x10b   :  { %391 = dma.done.wait [#allocation3], 2048  }
 0x10c   :  { %392 = vsyncadd [#allocation3], 4294965248 }
 0x10d   :  { %269 = vsyncpa [#allocation3], 1 }

</bundles_post_ra>
